<compile_context>
chip_gen: v6e
topology: v6e:2x2x1
jax: 0.10.0
libtpu: 0.0.40
codegen_flags: <defaults>
</compile_context>

<pallas_src>
import functools

import jax
import jax.numpy as jnp
from jax.experimental import pallas as pl
from jax.experimental.pallas import tpu as pltpu

TILE = 128          # node-count padding granule
LANE = 128          # channel dims padded to multiples of this (lane-dense IO)
NEG_INF = -1e30     # finite "minus infinity" for the online-softmax init
VMEM_LIMIT_BYTES = 48 * 1024 * 1024   # < v7x 64 MiB physical; fine on v5e/v6e


def _round_up(a, b):
    return (a + b - 1) // b * b


def _pick_tiles(n_pad):
    """Attention tile sizes: big source tiles, >=2 target row tiles if possible."""
    if n_pad % 512 == 0:
        tile_j = 512
    elif n_pad % 256 == 0:
        tile_j = 256
    else:
        tile_j = 128
    if n_pad % 256 == 0 and n_pad // 256 >= 2:
        tile_i = 256
    else:
        tile_i = 128
    return min(tile_i, n_pad), min(tile_j, n_pad)


# --------------------------- fused projection kernel ------------------------
def proj_kernel(x_ref, wr_ref, br_ref, wlt_ref, blt_ref, xr_ref, xlt_ref):
    # xr  = x @ W_r + b_r                       (tile, hc_pad)
    # xlt = (W_l^T) @ x^T + b_l^T  via A.B^T    (hc_pad, tile)  -- already
    # transposed so the attention kernel gets source nodes on the lane axis.
    x = x_ref[...].astype(jnp.bfloat16)
    xr_ref[...] = (jnp.dot(x, wr_ref[...].astype(jnp.bfloat16),
                           preferred_element_type=jnp.float32)
                   + br_ref[...])
    xlt_ref[...] = (jax.lax.dot_general(
        wlt_ref[...].astype(jnp.bfloat16), x,
        dimension_numbers=(((1,), (1,)), ((), ())),
        preferred_element_type=jnp.float32)
        + blt_ref[...])


def linear_proj(x, wr_p, br_p, wlt_p, blt_p, hc_pad, *, tile_pref=512):
    n, f_in_x = x.shape
    tile_p = min(tile_pref, n)
    while n % tile_p:
        tile_p //= 2
    return pl.pallas_call(
        proj_kernel,
        out_shape=(jax.ShapeDtypeStruct((n, hc_pad), jnp.float32),
                   jax.ShapeDtypeStruct((hc_pad, n), jnp.float32)),
        grid=(n // tile_p,),
        in_specs=[
            pl.BlockSpec((tile_p, f_in_x), lambda i: (i, 0)),
            pl.BlockSpec((f_in_x, hc_pad), lambda i: (0, 0)),
            pl.BlockSpec((1, hc_pad), lambda i: (0, 0)),
            pl.BlockSpec((hc_pad, f_in_x), lambda i: (0, 0)),
            pl.BlockSpec((hc_pad, 1), lambda i: (0, 0)),
        ],
        out_specs=(pl.BlockSpec((tile_p, hc_pad), lambda i: (i, 0)),
                   pl.BlockSpec((hc_pad, tile_p), lambda i: (0, i))),
        compiler_params=pltpu.CompilerParams(
            dimension_semantics=("parallel",),
            vmem_limit_bytes=VMEM_LIMIT_BYTES),
    )(x, wr_p, br_p, wlt_p, blt_p)


# ------------------------------ attention kernel -----------------------------
def gatv2_attn_kernel(tmask_ref, xr_ref, xlt_ref, adj_ref, att_ref, bias_ref,
                      out_ref, m_ref, l_ref, acc_ref, *,
                      heads, out_ch, hc_pad, tile_i, tile_j,
                      negative_slope, apply_elu):
    """GATv2 attention for one (target-tile i, source-tile j) pair.

    Online-softmax accumulation over source tiles (grid axis 1):
      m_ref  : (H, TI, 1) running max of logits per head
      l_ref  : (H, TI, 1) running softmax denominator per head
      acc_ref: (TI, hc_pad) running (unnormalized) weighted message sum
    Empty adjacency tiles are skipped entirely via the scalar-prefetched
    tile mask (self-loops keep every row's softmax well defined).
    """
    i = pl.program_id(0)
    j = pl.program_id(1)
    nj = pl.num_programs(1)
    hc = heads * out_ch

    @pl.when(j == 0)
    def _init():
        m_ref[...] = jnp.full(m_ref.shape, NEG_INF, jnp.float32)
        l_ref[...] = jnp.zeros(l_ref.shape, jnp.float32)
        acc_ref[...] = jnp.zeros(acc_ref.shape, jnp.float32)

    @pl.when(tmask_ref[i, j] > 0)
    def _body():
        mask = adj_ref[...] > 0                                  # (TI, TJ) int8 cmp
        xlt_bf = xlt_ref[...].astype(jnp.bfloat16)               # hoisted cast
        col_ids = jax.lax.broadcasted_iota(jnp.int32, (tile_i, hc_pad), 1)

        msg_full = jnp.zeros((tile_i, hc_pad), jnp.float32)
        corr_full = jnp.ones((tile_i, hc_pad), jnp.float32)

        for h in range(heads):                                   # heads is small
            c0 = h * out_ch
            # ---- pairwise logits, channel-by-channel, lane-dense 2-D ----
            # e[i, j] = sum_c att[c] * leaky_relu(xr[i, c] + xl[j, c])
            e = None
            for c in range(out_ch):
                cc = c0 + c
                z = xr_ref[:, cc:cc + 1] + xlt_ref[cc:cc + 1, :]   # (TI, TJ)
                lz = jnp.maximum(z, negative_slope * z)            # leaky relu
                t = att_ref[cc] * lz                               # SMEM scalar
                e = t if e is None else e + t

            # ---- online softmax update (masked; no -inf bias needed) ----
            m_old = m_ref[h]                                       # (TI, 1)
            m_new = jnp.maximum(m_old, jnp.max(e, axis=-1, keepdims=True))
            p = jnp.where(mask, jnp.exp(e - m_new), jnp.float32(0.0))
            corr = jnp.exp(m_old - m_new)                          # (TI, 1)
            l_ref[h] = corr * l_ref[h] + jnp.sum(p, axis=-1, keepdims=True)
            m_ref[h] = m_new

            # ---- aggregation: full-width MXU matmul, head columns selected ----
            msg_h = jax.lax.dot_general(
                p.astype(jnp.bfloat16), xlt_bf,
                dimension_numbers=(((1,), (1,)), ((), ())),
                preferred_element_type=jnp.float32)                # (TI, hc_pad)
            head_cols = (col_ids >= c0) & (col_ids < c0 + out_ch)
            msg_full = jnp.where(head_cols, msg_h, msg_full)
            corr_full = jnp.where(head_cols, corr, corr_full)

        # ONE lane-dense read-modify-write of the accumulator per source tile.
        acc_ref[...] = corr_full * acc_ref[...] + msg_full

    @pl.when(j == nj - 1)
    def _finalize():
        col_ids = jax.lax.broadcasted_iota(jnp.int32, (tile_i, hc_pad), 1)
        inv_full = jnp.ones((tile_i, hc_pad), jnp.float32)
        for h in range(heads):
            c0 = h * out_ch
            inv = pl.reciprocal(l_ref[h], approx=True)             # EUP, (TI, 1)
            head_cols = (col_ids >= c0) & (col_ids < c0 + out_ch)
            inv_full = jnp.where(head_cols, inv, inv_full)
        o = acc_ref[...] * inv_full + bias_ref[...]
        if apply_elu:
            o = jnp.where(o > 0, o, jnp.exp(o) - 1.0)
        out_ref[...] = o                                           # lane-dense store


def gatv2_attention(xr, xlt, adj, tile_any, att, bias, *, heads, out_ch,
                    hc_pad, apply_elu, tile_i, tile_j, negative_slope=0.2):
    n = xr.shape[0]
    kernel = functools.partial(
        gatv2_attn_kernel, heads=heads, out_ch=out_ch, hc_pad=hc_pad,
        tile_i=tile_i, tile_j=tile_j,
        negative_slope=negative_slope, apply_elu=apply_elu)
    grid_spec = pltpu.PrefetchScalarGridSpec(
        num_scalar_prefetch=1,                                  # tile_any -> SMEM
        grid=(n // tile_i, n // tile_j),
        in_specs=[
            pl.BlockSpec((tile_i, hc_pad), lambda i, j, t: (i, 0)),   # xr
            pl.BlockSpec((hc_pad, tile_j), lambda i, j, t: (0, j)),   # xl^T
            pl.BlockSpec((tile_i, tile_j), lambda i, j, t: (i, j)),   # adj int8
            pl.BlockSpec(memory_space=pltpu.MemorySpace.SMEM),        # att (hc,)
            pl.BlockSpec((1, hc_pad), lambda i, j, t: (0, 0)),        # bias
        ],
        out_specs=pl.BlockSpec((tile_i, hc_pad), lambda i, j, t: (i, 0)),
        scratch_shapes=[
            pltpu.VMEM((heads, tile_i, 1), jnp.float32),   # running max  m
            pltpu.VMEM((heads, tile_i, 1), jnp.float32),   # running sum  l
            pltpu.VMEM((tile_i, hc_pad), jnp.float32),     # output accumulator
        ],
    )
    return pl.pallas_call(
        kernel,
        out_shape=jax.ShapeDtypeStruct((n, hc_pad), jnp.float32),
        grid_spec=grid_spec,
        compiler_params=pltpu.CompilerParams(
            dimension_semantics=("parallel", "arbitrary"),
            vmem_limit_bytes=VMEM_LIMIT_BYTES),
    )(tile_any, xr, xlt, adj, att, bias)


# ------------------------------- one GATv2 layer -----------------------------
def gatv2_layer(x, adj, tile_any, params, *, heads, out_ch, apply_elu,
                tile_i, tile_j):
    """One dense GATv2Conv layer; x may carry zero lane-padding columns."""
    wl, bl, wr, br, att, bias = params
    f_in_x = x.shape[1]          # possibly padded input width
    f_in = wl.shape[0]           # true input width
    hc = heads * out_ch
    hc_pad = _round_up(hc, LANE)
    # Pad weights/biases (zero rows for padded input columns, zero output cols).
    wr_p = jnp.zeros((f_in_x, hc_pad), jnp.float32).at[:f_in, :hc].set(wr)
    br_p = jnp.zeros((1, hc_pad), jnp.float32).at[:, :hc].set(br)
    wlt_p = jnp.zeros((hc_pad, f_in_x), jnp.float32).at[:hc, :f_in].set(wl.T)
    blt_p = jnp.zeros((hc_pad, 1), jnp.float32).at[:hc, :].set(bl.reshape(hc, 1))
    xr, xlt = linear_proj(x, wr_p, br_p, wlt_p, blt_p, hc_pad)
    att_flat = att.reshape(hc)
    bias_p = jnp.zeros((1, hc_pad), jnp.float32).at[:, :hc].set(bias)
    # Output stays lane-padded (N, hc_pad); next layer consumes it directly.
    return gatv2_attention(xr, xlt, adj, tile_any, att_flat, bias_p,
                           heads=heads, out_ch=out_ch, hc_pad=hc_pad,
                           apply_elu=apply_elu, tile_i=tile_i, tile_j=tile_j)


# ----------------------- plain-JAX reference (for checking) ------------------
def gatv2_ref(x, adj, params, heads, out_ch, negative_slope=0.2, elu=False):
    wl, bl, wr, br, att, bias = params
    xb = x.astype(jnp.bfloat16)
    xl = jnp.dot(xb, wl.astype(jnp.bfloat16),
                 preferred_element_type=jnp.float32) + bl
    xr = jnp.dot(xb, wr.astype(jnp.bfloat16),
                 preferred_element_type=jnp.float32) + br
    outs = []
    for h in range(heads):
        c0, c1 = h * out_ch, (h + 1) * out_ch
        xl_h, xr_h, att_h = xl[:, c0:c1], xr[:, c0:c1], att[h]
        z = xr_h[:, None, :] + xl_h[None, :, :]
        z = jnp.where(z > 0, z, negative_slope * z)
        e = jnp.sum(z * att_h[None, None, :], -1)
        e = jnp.where(adj > 0, e, NEG_INF)
        p = jnp.exp(e - jnp.max(e, -1, keepdims=True))
        p = jnp.where(adj > 0, p, 0.0)
        alpha = p / jnp.sum(p, -1, keepdims=True)
        o = jnp.dot(alpha.astype(jnp.bfloat16), xl_h.astype(jnp.bfloat16),
                    preferred_element_type=jnp.float32) + bias[0, c0:c1][None, :]
        if elu:
            o = jnp.where(o > 0, o, jnp.exp(o) - 1.0)
        outs.append(o)
    return jnp.concatenate(outs, axis=-1)


# ----------------------------- parameter / graph setup -----------------------
def make_gatv2_params(key, f_in, heads, out_ch):
    ks = jax.random.split(key, 5)
    scale = 1.0 / jnp.sqrt(jnp.float32(f_in))
    wl = jax.random.normal(ks[0], (f_in, heads * out_ch), jnp.float32) * scale
    wr = jax.random.normal(ks[1], (f_in, heads * out_ch), jnp.float32) * scale
    bl = jax.random.normal(ks[2], (1, heads * out_ch), jnp.float32) * 0.1
    br = jax.random.normal(ks[3], (1, heads * out_ch), jnp.float32) * 0.1
    att = jax.random.normal(ks[4], (heads, out_ch), jnp.float32) * scale
    bias = jnp.zeros((1, heads * out_ch), jnp.float32)
    return (wl, bl, wr, br, att, bias)


def build_adjacency(edge_index, num_nodes):
    # edge_index rows are (src, dst); dense int8 mask adj[dst, src] = 1, plus
    # self loops on the full diagonal (GATv2Conv add_self_loops=True; for
    # padded rows the self loop also keeps their softmax well defined).
    # TODO(synk): a dense mask dedups duplicate edges; PyG message passing
    # would count duplicates as separate softmax terms on multigraphs.
    src = edge_index[:, 0]
    dst = edge_index[:, 1]
    adj = jnp.zeros((num_nodes, num_nodes), jnp.int8)
    adj = adj.at[dst, src].set(1)
    diag = jnp.arange(num_nodes)
    adj = adj.at[diag, diag].set(1)
    return adj


# --------------------------------- full forward ------------------------------
def gat_forward(x, edge_index, params1, params2, dim_h, heads, dim_out):
    f_in = x.shape[-1]
    x2 = x.reshape(-1, f_in)                     # x.view(-1, x.size(-1))
    n = x2.shape[0]
    n_pad = _round_up(n, TILE)
    x_pad = jnp.zeros((n_pad, f_in), jnp.float32).at[:n, :].set(x2)
    adj = build_adjacency(edge_index, n_pad)     # int8, padded, self-loops
    tile_i, tile_j = _pick_tiles(n_pad)
    # Per-(target-tile, source-tile) "has any edge" table for tile skipping.
    tile_any = (adj.reshape(n_pad // tile_i, tile_i, n_pad // tile_j, tile_j)
                .max(axis=(1, 3)).astype(jnp.int32))
    h = gatv2_layer(x_pad, adj, tile_any, params1, heads=heads, out_ch=dim_h,
                    apply_elu=True, tile_i=tile_i, tile_j=tile_j)   # gat1 + elu
    out = gatv2_layer(h, adj, tile_any, params2, heads=1, out_ch=dim_out,
                      apply_elu=False, tile_i=tile_i, tile_j=tile_j)  # gat2
    return out[:n, :dim_out]


if __name__ == "__main__":
    key = jax.random.PRNGKey(0)
    k_x, k_e1, k_e2, k_p1, k_p2 = jax.random.split(key, 5)

    B, Nn, dim_in = 2, 8, 8        # x is (2, 8, 8) -> 16 nodes of dim 8
    dim_h, heads, dim_out = 16, 2, 8
    N = B * Nn
    E = 32

    x = jax.random.normal(k_x, (B, Nn, dim_in), jnp.float32)
    src = jax.random.randint(k_e1, (E,), 0, N)
    dst = jax.random.randint(k_e2, (E,), 0, N)
    edge_index = jnp.stack([src, dst], axis=1)     # (E, 2) rows of (src, dst)

    params1 = make_gatv2_params(k_p1, dim_in, heads, dim_h)
    params2 = make_gatv2_params(k_p2, heads * dim_h, 1, dim_out)

    out = gat_forward(x, edge_index, params1, params2, dim_h, heads, dim_out)
    out = jax.block_until_ready(out)

    # correctness check against plain-JAX reference of the same math
    x2 = x.reshape(-1, dim_in)
    adj_ref_mask = build_adjacency(edge_index, N)
    h_ref = gatv2_ref(x2, adj_ref_mask, params1, heads, dim_h, elu=True)
    out_ref = gatv2_ref(h_ref, adj_ref_mask, params2, 1, dim_out, elu=False)
    assert out.shape == (N, dim_out)
    max_err = float(jnp.max(jnp.abs(out - out_ref)))
    assert jnp.allclose(out, out_ref, atol=5e-2, rtol=5e-2), max_err

    print("KERNEL_OK")
</pallas_src>

<mosaic_0001>
module attributes {stable_mosaic.version = 11 : i64} {
  func.func @proj_kernel(%arg0: i32, %arg1: memref<128x8xf32, #tpu.memory_space<vmem>>, %arg2: memref<8x128xf32, #tpu.memory_space<vmem>>, %arg3: memref<1x128xf32, #tpu.memory_space<vmem>>, %arg4: memref<128x8xf32, #tpu.memory_space<vmem>>, %arg5: memref<128x1xf32, #tpu.memory_space<vmem>>, %arg6: memref<128x128xf32, #tpu.memory_space<vmem>>, %arg7: memref<128x128xf32, #tpu.memory_space<vmem>>) attributes {dimension_semantics = [#tpu.dimension_semantics<parallel>], iteration_bounds = array<i64: 1>, scalar_prefetch = 0 : i64, scratch_operands = 0 : i64, tpu.core_type = #tpu.core_type<tc>, window_params = [{transform_indices = @transform_0, window_bounds = array<i64: 128, 8>}, {pipeline_mode = #tpu.pipeline_mode<synchronous>, transform_indices = @transform_1, window_bounds = array<i64: 8, 128>}, {pipeline_mode = #tpu.pipeline_mode<synchronous>, transform_indices = @transform_2, window_bounds = array<i64: 1, 128>}, {pipeline_mode = #tpu.pipeline_mode<synchronous>, transform_indices = @transform_3, window_bounds = array<i64: 128, 8>}, {pipeline_mode = #tpu.pipeline_mode<synchronous>, transform_indices = @transform_4, window_bounds = array<i64: 128, 1>}, {transform_indices = @transform_5, window_bounds = array<i64: 128, 128>}, {transform_indices = @transform_6, window_bounds = array<i64: 128, 128>}]} {
    %c0 = arith.constant 0 : index
    %c0_0 = arith.constant 0 : index
    %0 = vector.load %arg1[%c0, %c0_0] : memref<128x8xf32, #tpu.memory_space<vmem>>, vector<128x8xf32>
    %1 = arith.truncf %0 : vector<128x8xf32> to vector<128x8xbf16>
    %c0_1 = arith.constant 0 : index
    %c0_2 = arith.constant 0 : index
    %2 = vector.load %arg2[%c0_1, %c0_2] : memref<8x128xf32, #tpu.memory_space<vmem>>, vector<8x128xf32>
    %3 = arith.truncf %2 : vector<8x128xf32> to vector<8x128xbf16>
    %cst = arith.constant dense<0.000000e+00> : vector<128x128xf32>
    %4 = tpu.matmul %1, %3, %cst {dimension_numbers = #tpu.dot_dimension_numbers<[1], [0], [0], [1], [0, 0, 1, 1], [], []>} : vector<128x8xbf16>, vector<8x128xbf16>, vector<128x128xf32> -> vector<128x128xf32>
    %c0_3 = arith.constant 0 : index
    %c0_4 = arith.constant 0 : index
    %5 = vector.load %arg3[%c0_3, %c0_4] : memref<1x128xf32, #tpu.memory_space<vmem>>, vector<1x128xf32>
    %6 = vector.broadcast %5 : vector<1x128xf32> to vector<128x128xf32>
    %7 = arith.addf %4, %6 : vector<128x128xf32>
    %c0_5 = arith.constant 0 : index
    %c0_6 = arith.constant 0 : index
    %8 = vector.load %arg6[%c0_5, %c0_6] : memref<128x128xf32, #tpu.memory_space<vmem>>, vector<128x128xf32>
    tpu.vector_store %arg6[%c0_5, %c0_6], %7 {strides = array<i32>} : memref<128x128xf32, #tpu.memory_space<vmem>>, vector<128x128xf32>,
    %c0_7 = arith.constant 0 : index
    %c0_8 = arith.constant 0 : index
    %9 = vector.load %arg4[%c0_7, %c0_8] : memref<128x8xf32, #tpu.memory_space<vmem>>, vector<128x8xf32>
    %10 = arith.truncf %9 : vector<128x8xf32> to vector<128x8xbf16>
    %cst_9 = arith.constant dense<0.000000e+00> : vector<128x128xf32>
    %11 = tpu.matmul %10, %1, %cst_9 {dimension_numbers = #tpu.dot_dimension_numbers<[1], [1], [0], [0], [0, 0, 1, 0], [], []>} : vector<128x8xbf16>, vector<128x8xbf16>, vector<128x128xf32> -> vector<128x128xf32>
    %c0_10 = arith.constant 0 : index
    %c0_11 = arith.constant 0 : index
    %12 = vector.load %arg5[%c0_10, %c0_11] : memref<128x1xf32, #tpu.memory_space<vmem>>, vector<128x1xf32>
    %13 = vector.broadcast %12 : vector<128x1xf32> to vector<128x128xf32>
    %14 = arith.addf %11, %13 : vector<128x128xf32>
    %c0_12 = arith.constant 0 : index
    %c0_13 = arith.constant 0 : index
    %15 = vector.load %arg7[%c0_12, %c0_13] : memref<128x128xf32, #tpu.memory_space<vmem>>, vector<128x128xf32>
    tpu.vector_store %arg7[%c0_12, %c0_13], %14 {strides = array<i32>} : memref<128x128xf32, #tpu.memory_space<vmem>>, vector<128x128xf32>,
    return
  }
  func.func @transform_0(%arg0: i32) -> (i32, i32) {
    %c0_i32 = arith.constant 0 : i32
    %c0_i32_0 = arith.constant 0 : i32
    return %arg0, %c0_i32 : i32, i32
  }
  func.func @transform_1(%arg0: i32) -> (i32, i32) {
    %c0_i32 = arith.constant 0 : i32
    %c0_i32_0 = arith.constant 0 : i32
    %c0_i32_1 = arith.constant 0 : i32
    return %c0_i32, %c0_i32_0 : i32, i32
  }
  func.func @transform_2(%arg0: i32) -> (i32, i32) {
    %c0_i32 = arith.constant 0 : i32
    %c0_i32_0 = arith.constant 0 : i32
    %c0_i32_1 = arith.constant 0 : i32
    return %c0_i32, %c0_i32_0 : i32, i32
  }
  func.func @transform_3(%arg0: i32) -> (i32, i32) {
    %c0_i32 = arith.constant 0 : i32
    %c0_i32_0 = arith.constant 0 : i32
    %c0_i32_1 = arith.constant 0 : i32
    return %c0_i32, %c0_i32_0 : i32, i32
  }
  func.func @transform_4(%arg0: i32) -> (i32, i32) {
    %c0_i32 = arith.constant 0 : i32
    %c0_i32_0 = arith.constant 0 : i32
    %c0_i32_1 = arith.constant 0 : i32
    return %c0_i32, %c0_i32_0 : i32, i32
  }
  func.func @transform_5(%arg0: i32) -> (i32, i32) {
    %c0_i32 = arith.constant 0 : i32
    %c0_i32_0 = arith.constant 0 : i32
    return %arg0, %c0_i32 : i32, i32
  }
  func.func @transform_6(%arg0: i32) -> (i32, i32) {
    %c0_i32 = arith.constant 0 : i32
    %c0_i32_0 = arith.constant 0 : i32
    return %c0_i32, %arg0 : i32, i32
  }
}

</mosaic_0001>

<bundles_post_ra>
// kernel: tpu_custom_call.1
= control target key start
LH: loop header
LB: loop body
LE: loop exit
PB: predicated region body
PF: predicated region fallthrough
CT: control target
= control target key end

     0   :  { %12 = vsyncpa [#allocation3], 0  ;;  %vm83_vm0 = vcmask 1043456   ;;  %vm58_vm1 = vcmask 64512   ;;  %v665_v8 = vmov 0   ;;  %s933_s0 = inlined_call_operand.vmem [shape: f32[128,8], index: 0, kind: input, shape index: {}]   ;;  %s934_s1 = inlined_call_operand.vmem [shape: f32[8,128], index: 1, kind: input, shape index: {}]   ;;  %s935_s2 = inlined_call_operand.vmem [shape: f32[1,128], index: 2, kind: input, shape index: {}]   ;;  %s936_s3 = inlined_call_operand.vmem [shape: f32[128,8], index: 3, kind: input, shape index: {}]   ;;  %s937_s4 = inlined_call_operand.vmem [shape: f32[128,1], index: 4, kind: input, shape index: {}]   ;;  %s938_s5 = inlined_call_operand.hbm [shape: f32[128,128], index: 5, kind: output, shape index: {0}]   ;;  %s939_s6 = inlined_call_operand.hbm [shape: f32[128,128], index: 6, kind: output, shape index: {1}]  }
   0x1   :  { %v49_v0 = vld [vmem:[%s934_s1] sm:$0xff]  ;;  %v39_v1 = vld [vmem:[%s933_s0 + $0x70] sm:$0xff]  ;;  %v40_v2 = vld [vmem:[%s933_s0 + $0x78] sm:$0xff]  ;;  %620 = vset.pattern.permute.xlu1 %v665_v8  ;;  %619 = vset.pattern.permute.xlu0 %v665_v8 }
   0x2   :  { %v50_v3 = vpack.c.bf16 %v49_v0, %v49_v0  ;;  %v714_v4 = vpack.c.bf16 %v40_v2, %v39_v1  ;;  %v25_v5 = vld [vmem:[%s933_s0] sm:$0xff]  ;;  %v26_v6 = vld [vmem:[%s933_s0 + $0x8] sm:$0xff]  ;;  %v27_v7 = vld [vmem:[%s933_s0 + $0x10] sm:$0xff] }
   0x3   :  { %v725_v9 = vpack.c.bf16 %v26_v6, %v25_v5  ;;  %v28_v10 = vld [vmem:[%s933_s0 + $0x18] sm:$0xff]  ;;  %v37_v11 = vld [vmem:[%s933_s0 + $0x60] sm:$0xff]  ;;  %v38_v12 = vld [vmem:[%s933_s0 + $0x68] sm:$0xff] }
   0x4   :  { %597 = vmatprep.subr.msk.bf16.mxu0 %vm83_vm0, %v50_v3  ;;  %599 = vmatprep.subr.msk.bf16.mxu1 %vm58_vm1, %v714_v4  ;;  %v85_v13 = vsel %vm83_vm0, %v50_v3, 0  ;;  %v81_v14 = vsel %vm58_vm1, %v714_v4, 0  ;;  %v742_v15 = vpack.c.bf16 %v28_v10, %v27_v7  ;;  %v47_v16 = vpack.c.bf16 %v38_v12, %v37_v11  ;;  %v29_v17 = vld [vmem:[%s933_s0 + $0x20] sm:$0xff]  ;;  %v30_v18 = vld [vmem:[%s933_s0 + $0x28] sm:$0xff]  ;;  %v35_v20 = vld [vmem:[%s933_s0 + $0x50] sm:$0xff] }
   0x5   :  { %532 = vmatpush3.bf16.msra.mxu0 %v85_v13  ;;  %589 = vmatpush3.bf16.xpose.msra.mxu1 %v81_v14  ;;  %v204_v19 = vld [vmem:[%s936_s3 + $0x20] sm:$0xff]  ;;  %v36_v21 = vld [vmem:[%s933_s0 + $0x58] sm:$0xff]  ;;  %v764_v22 = vpack.c.bf16 %v30_v18, %v29_v17  ;;  %v205_v23 = vld [vmem:[%s936_s3 + $0x28] sm:$0xff] }
   0x6   :  { %533 = vmatprep.mubr.msk.bf16.mxu0 %vm58_vm1, %v725_v9  ;;  %598 = vmatprep.subr.msk.bf16.mxu0 %vm58_vm1, %v714_v4  ;;  %v218_v24 = vpack.c.bf16 %v205_v23, %v204_v19  ;;  %v78_v25 = vsel %vm58_vm1, %v47_v16, 0  ;;  %v46_v26 = vpack.c.bf16 %v36_v21, %v35_v20  ;;  %v33_v27 = vld [vmem:[%s933_s0 + $0x40] sm:$0xff]  ;;  %v31_v28 = vld [vmem:[%s933_s0 + $0x30] sm:$0xff]  ;;  %v32_v29 = vld [vmem:[%s933_s0 + $0x38] sm:$0xff] }
   0x7   :  { %601 = vmatprep.subr.msk.bf16.mxu1 %vm58_vm1, %v47_v16  ;;  %v34_v30 = vld [vmem:[%s933_s0 + $0x48] sm:$0xff]  ;;  %v226_v31 = vld [vmem:[%s937_s4 + $0x10] sm:$0xff]  ;;  %v224_v32 = vld [vmem:[%s937_s4] sm:$0xff]  ;;  %v44_v33 = vpack.c.bf16 %v32_v29, %v31_v28 }
   0x8   :  { %534 = vmatmul.mubr.msk.bf16.vlgmr.msra.gmra.mxu0 %vm58_vm1, %v742_v15  ;;  %569 = vmatprep.mubr.msk.bf16.mxu1 %vm58_vm1, %v218_v24  ;;  %v45_v34 = vpack.c.bf16 %v34_v30, %v33_v27  ;;  %v227_v35 = vld [vmem:[%s937_s4 + $0x18] sm:$0xff]  ;;  %v225_v36 = vld [vmem:[%s937_s4 + $0x8] sm:$0xff] }
   0x9   :  { %550 = vmatpush3.bf16.xpose.msra.mxu0 %v81_v14  ;;  %537 = vmatprep.mubr.msk.bf16.mxu0 %vm58_vm1, %v764_v22 }
   0xa   :  { %600 = vmatprep.subr.msk.bf16.mxu0 %vm58_vm1, %v47_v16  ;;  %252 = vperm.xlu1 %620, %v226_v31  }
   0xb   :  { %242 = vperm.xlu0 %619, %v224_v32  }
   0xd   :  { %590 = vmatpush3.bf16.xpose.msra.mxu1 %v78_v25 }
   0xe   :  { %603 = vmatprep.subr.msk.bf16.mxu1 %vm58_vm1, %v46_v26 }
  0x10   :  { %538 = vmatmul.mubr.msk.bf16.gmra.mxu0 %vm58_vm1, %v44_v33 }
  0x11   :  { %552 = vmatpush3.bf16.xpose.msra.mxu0 %v78_v25  ;;  %541 = vmatprep.mubr.msk.bf16.mxu0 %vm58_vm1, %v45_v34 }
  0x12   :  { %13 = vsyncpa [#allocation5], 0  ;;  %v75_v37 = vsel %vm58_vm1, %v46_v26, 0  ;;  %602 = vmatprep.subr.msk.bf16.mxu0 %vm58_vm1, %v46_v26  ;;  %257 = vperm.xlu1 %620, %v227_v35   ;;  %v229_v38 = vld [vmem:[%s937_s4 + $0x28] sm:$0xff]  ;;  %v228_v39 = vld [vmem:[%s937_s4 + $0x20] sm:$0xff]  ;;  %v72_v42 = vsel %vm58_vm1, %v45_v34, 0 }
  0x13   :  { %247 = vperm.xlu0 %619, %v225_v36   ;;  %v231_v40 = vld [vmem:[%s937_s4 + $0x38] sm:$0xff]  ;;  %v230_v41 = vld [vmem:[%s937_s4 + $0x30] sm:$0xff]  ;;  %v200_v43 = vld [vmem:[%s936_s3] sm:$0xff]  ;;  %v69_v50 = vsel %vm58_vm1, %v44_v33, 0  ;;  %v66_v55 = vsel %vm58_vm1, %v764_v22, 0  ;;  %v63_v56 = vsel %vm58_vm1, %v742_v15, 0 }
  0x14   :  { %v201_v44 = vld [vmem:[%s936_s3 + $0x8] sm:$0xff]  ;;  %v232_v46 = vld [vmem:[%s937_s4 + $0x40] sm:$0xff]  ;;  %v235_v48 = vld [vmem:[%s937_s4 + $0x58] sm:$0xff]  ;;  %v60_v57 = vsel %vm58_vm1, %v725_v9, 0 }
  0x15   :  { %591 = vmatpush3.bf16.xpose.msra.mxu1 %v75_v37  ;;  %v233_v45 = vld [vmem:[%s937_s4 + $0x48] sm:$0xff]  ;;  %v216_v47 = vpack.c.bf16 %v201_v44, %v200_v43  ;;  %v234_v49 = vld [vmem:[%s937_s4 + $0x50] sm:$0xff]  ;;  %v236_v52 = vld [vmem:[%s937_s4 + $0x60] sm:$0xff] }
  0x16   :  { %605 = vmatprep.subr.msk.bf16.mxu1 %vm58_vm1, %v45_v34  ;;  %267 = vperm.xlu1 %620, %v229_v38   ;;  %v237_v51 = vld [vmem:[%s937_s4 + $0x68] sm:$0xff]  ;;  %v239_v53 = vld [vmem:[%s937_s4 + $0x78] sm:$0xff]  ;;  %v238_v54 = vld [vmem:[%s937_s4 + $0x70] sm:$0xff] }
  0x17   :  { %262 = vperm.xlu0 %619, %v228_v39   ;;  %v206_v58 = vld [vmem:[%s936_s3 + $0x30] sm:$0xff]  ;;  %v207_v59 = vld [vmem:[%s936_s3 + $0x38] sm:$0xff]  ;;  %v208_v60 = vld [vmem:[%s936_s3 + $0x40] sm:$0xff] }
  0x18   :  { %542 = vmatmul.mubr.msk.bf16.gmra.mxu0 %vm58_vm1, %v46_v26  ;;  %v209_v61 = vld [vmem:[%s936_s3 + $0x48] sm:$0xff]  ;;  %v219_v62 = vpack.c.bf16 %v207_v59, %v206_v58  ;;  %v202_v63 = vld [vmem:[%s936_s3 + $0x10] sm:$0xff]  ;;  %v203_v0 = vld [vmem:[%s936_s3 + $0x18] sm:$0xff] }
  0x19   :  { %554 = vmatpush3.bf16.xpose.msra.mxu0 %v75_v37  ;;  %545 = vmatprep.mubr.msk.bf16.mxu0 %vm58_vm1, %v47_v16  ;;  %v220_v1 = vpack.c.bf16 %v209_v61, %v208_v60  ;;  %v217_v2 = vpack.c.bf16 %v203_v0, %v202_v63  ;;  %v210_v3 = vld [vmem:[%s936_s3 + $0x50] sm:$0xff]  ;;  %v212_v5 = vld [vmem:[%s936_s3 + $0x60] sm:$0xff]  ;;  %v213_v6 = vld [vmem:[%s936_s3 + $0x68] sm:$0xff] }
  0x1a   :  { %604 = vmatprep.subr.msk.bf16.mxu0 %vm58_vm1, %v45_v34  ;;  %277 = vperm.xlu1 %620, %v231_v40   ;;  %v222_v8 = vpack.c.bf16 %v213_v6, %v212_v5  ;;  %v215_v10 = vld [vmem:[%s936_s3 + $0x78] sm:$0xff]  ;;  %v489_v12 = vld [vmem:[%s935_s2] ss:$0 sm:$0xff]  ;;  %s666_s2 = smov [#allocation2]  }
  0x1b   :  { %272 = vperm.xlu0 %619, %v230_v41  }
  0x1d   :  { %592 = vmatpush3.bf16.xpose.msra.mxu1 %v72_v42 }
  0x1e   :  { %607 = vmatprep.subr.msk.bf16.mxu1 %vm58_vm1, %v44_v33  ;;  %287 = vperm.xlu1 %620, %v233_v45  }
  0x1f   :  { %282 = vperm.xlu0 %619, %v232_v46  }
  0x20   :  { %546 = vmatmul.mubr.msk.bf16.gmra.mxu0 %vm58_vm1, %v714_v4  ;;  %v211_v4 = vld [vmem:[%s936_s3 + $0x58] sm:$0xff] }
  0x21   :  { %556 = vmatpush3.bf16.xpose.msra.mxu0 %v72_v42  ;;  %565 = vmatprep.mubr.msk.bf16.mxu0 %vm58_vm1, %v216_v47  ;;  %v221_v7 = vpack.c.bf16 %v211_v4, %v210_v3 }
  0x22   :  { %606 = vmatprep.subr.msk.bf16.mxu0 %vm58_vm1, %v44_v33  ;;  %297 = vperm.xlu1 %620, %v235_v48  }
  0x23   :  { %292 = vperm.xlu0 %619, %v234_v49  }
  0x25   :  { %593 = vmatpush3.bf16.xpose.msra.mxu1 %v69_v50 }
  0x26   :  { %609 = vmatprep.subr.msk.bf16.mxu1 %vm58_vm1, %v764_v22  ;;  %307 = vperm.xlu1 %620, %v237_v51  }
  0x27   :  { %302 = vperm.xlu0 %619, %v236_v52  }
  0x29   :  { %558 = vmatpush3.bf16.xpose.msra.mxu0 %v69_v50 }
  0x2a   :  { %608 = vmatprep.subr.msk.bf16.mxu0 %vm58_vm1, %v764_v22  ;;  %317 = vperm.xlu1 %620, %v239_v53  }
  0x2b   :  { %312 = vperm.xlu0 %619, %v238_v54  }
  0x2d   :  { %594 = vmatpush3.bf16.xpose.msra.mxu1 %v66_v55 }
  0x2e   :  { %611 = vmatprep.subr.msk.bf16.mxu1 %vm58_vm1, %v742_v15 }
  0x31   :  { %560 = vmatpush3.bf16.xpose.msra.mxu0 %v66_v55 }
  0x32   :  { %610 = vmatprep.subr.msk.bf16.mxu0 %vm58_vm1, %v742_v15 }
  0x35   :  { %595 = vmatpush3.bf16.xpose.msra.mxu1 %v63_v56 }
  0x36   :  { %613 = vmatprep.subr.msk.bf16.mxu1 %vm58_vm1, %v725_v9 }
  0x39   :  { %562 = vmatpush3.bf16.xpose.msra.mxu0 %v63_v56 }
  0x3a   :  { %612 = vmatprep.subr.msk.bf16.mxu0 %vm58_vm1, %v725_v9  ;;  %v214_v9 = vld [vmem:[%s936_s3 + $0x70] sm:$0xff]  ;;  %s462_s3 = sshll.u32 %s666_s2, 4  ;;  %s463_s3 = int_to_ptr.vmem [resolvable:$true] %s462_s3 }
  0x3b   :  { %v223_v11 = vpack.c.bf16 %v215_v10, %v214_v9  ;;  %s621_s17 = scalar_lea.vmem %s463_s3, 2048  ;;  %p626_p1 = scmp.lt.s32.totalorder %s463_s3, %s463_s3 }
  0x3c   :  { %p622_p0 = scmp.ne.s32.totalorder %s463_s3, %s621_s17  ;;  %p627_p2 = scmp.lt.s32.totalorder %s621_s17, %s621_s17 }
  0x3d   :  { %596 = vmatpush3.bf16.xpose.msra.mxu1 %v60_v57 }
  0x3e   :  { %p628_p3 = por %p627_p2, %p626_p1 }
  0x40   :  { %p629_p4 = pnand %p628_p3, %p622_p0 }
  0x41   :  { %564 = vmatpush3.bf16.xpose.msra.mxu0 %v60_v57 }
  0x44   :  { %570 = vmatmul.mubr.msk.bf16.vlgmr.msra.gmra.mxu1 %vm58_vm1, %v219_v62 }
  0x45   :  { %573 = vmatprep.mubr.msk.bf16.mxu1 %vm58_vm1, %v220_v1 }
  0x48   :  { %566 = vmatmul.mubr.msk.bf16.vlgmr.msra.gmra.mxu0 %vm58_vm1, %v217_v2 }
  0x4c   :  { %574 = vmatmul.mubr.msk.bf16.gmra.mxu1 %vm58_vm1, %v221_v7 }
  0x4d   :  { %577 = vmatprep.mubr.msk.bf16.mxu1 %vm58_vm1, %v222_v8 }
  0x54   :  { %578 = vmatmul.mubr.msk.bf16.gmra.mxu1 %vm58_vm1, %v223_v11 }
  0x86   :  { %v243_v45 = vpop.permute.xlu0 %242 }
  0xc8   :  { %v535_v13 = vpop.f32.mrf.mxu0 }
  0xc9   :  { %v130_v14 = vadd.f32 %v535_v13, %v489_v12 }
  0xca   :  { %v121_v15 = vpop.f32.mrf.mxu0 }
  0xcb   :  { %186 = vst [vmem:[#allocation2 + $0x10] sm:$0xff] %v130_v14  ;;  %v122_v16 = vadd.f32 %v489_v12, %v121_v15 }
  0xcc   :  { %v536_v17 = vpop.f32.mrf.mxu0 }
  0xcd   :  { %184 = vst [vmem:[#allocation2] sm:$0xff] %v122_v16  ;;  %v133_v18 = vadd.f32 %v536_v17, %v489_v12 }
  0xce   :  { %v124_v19 = vpop.f32.mrf.mxu0 }
  0xcf   :  { %187 = vst [vmem:[#allocation2 + $0x18] sm:$0xff] %v133_v18  ;;  %v125_v20 = vadd.f32 %v489_v12, %v124_v19 }
  0xd0   :  { %v539_v21 = vpop.f32.mrf.mxu0 }
  0xd1   :  { %185 = vst [vmem:[#allocation2 + $0x8] sm:$0xff] %v125_v20  ;;  %v146_v22 = vadd.f32 %v539_v21, %v489_v12 }
  0xd2   :  { %v137_v23 = vpop.f32.mrf.mxu0 }
  0xd3   :  { %190 = vst [vmem:[#allocation2 + $0x30] sm:$0xff] %v146_v22  ;;  %v138_v24 = vadd.f32 %v489_v12, %v137_v23 }
  0xd4   :  { %v540_v25 = vpop.f32.mrf.mxu0 }
  0xd5   :  { %188 = vst [vmem:[#allocation2 + $0x20] sm:$0xff] %v138_v24  ;;  %v149_v26 = vadd.f32 %v540_v25, %v489_v12 }
  0xd6   :  { %v140_v27 = vpop.f32.mrf.mxu0 }
  0xd7   :  { %191 = vst [vmem:[#allocation2 + $0x38] sm:$0xff] %v149_v26  ;;  %v141_v28 = vadd.f32 %v489_v12, %v140_v27 }
  0xd8   :  { %v543_v29 = vpop.f32.mrf.mxu0 }
  0xd9   :  { %189 = vst [vmem:[#allocation2 + $0x28] sm:$0xff] %v141_v28  ;;  %v162_v30 = vadd.f32 %v543_v29, %v489_v12 }
  0xda   :  { %v153_v31 = vpop.f32.mrf.mxu0 }
  0xdb   :  { %194 = vst [vmem:[#allocation2 + $0x50] sm:$0xff] %v162_v30  ;;  %v154_v32 = vadd.f32 %v489_v12, %v153_v31 }
  0xdc   :  { %v544_v33 = vpop.f32.mrf.mxu0 }
  0xdd   :  { %192 = vst [vmem:[#allocation2 + $0x40] sm:$0xff] %v154_v32  ;;  %v165_v34 = vadd.f32 %v544_v33, %v489_v12 }
  0xde   :  { %v156_v35 = vpop.f32.mrf.mxu0 }
  0xdf   :  { %195 = vst [vmem:[#allocation2 + $0x58] sm:$0xff] %v165_v34  ;;  %v157_v36 = vadd.f32 %v489_v12, %v156_v35 }
  0xe0   :  { %v547_v37 = vpop.f32.mrf.mxu0 }
  0xe1   :  { %193 = vst [vmem:[#allocation2 + $0x48] sm:$0xff] %v157_v36  ;;  %v178_v38 = vadd.f32 %v547_v37, %v489_v12 }
  0xe2   :  { %v169_v39 = vpop.f32.mrf.mxu0 }
  0xe3   :  { %198 = vst [vmem:[#allocation2 + $0x70] sm:$0xff] %v178_v38  ;;  %v170_v40 = vadd.f32 %v489_v12, %v169_v39 }
  0xe4   :  { %v548_v41 = vpop.f32.mrf.mxu0 }
  0xe5   :  { %196 = vst [vmem:[#allocation2 + $0x60] sm:$0xff] %v170_v40  ;;  %v181_v42 = vadd.f32 %v548_v41, %v489_v12 }
  0xe6   :  { %v172_v43 = vpop.f32.mrf.mxu0 }
  0xe7   :  { %199 = vst [vmem:[#allocation2 + $0x78] sm:$0xff] %v181_v42  ;;  %v173_v44 = vadd.f32 %v489_v12, %v172_v43 }
  0xe9   :  { %197 = vst [vmem:[#allocation2 + $0x68] sm:$0xff] %v173_v44 }
  0xea   :  { %632 = shalt.err (!%p629_p4)
}
  0xeb   :  { %s667_s4 = smov 128   ;;  %s668_s18 = smov 8   ;;  %v253_v46 = vpop.permute.xlu1 %252  ;;  %v248_v47 = vpop.permute.xlu0 %247 }
  0xec   :  { %468 = dma.vmem_to_hbm [thread:$0]  %s463_s3, 2048, %s938_s5, [#allocation3], %s667_s4, %s667_s4, %s668_s18  }
  0xed   :  { %s669_s5 = smov [#allocation4]  }
  0xee   :  { %s474_s21 = sshll.u32 %s669_s5, 4  ;;  %s475_s21 = int_to_ptr.vmem [resolvable:$true] %s474_s21 }
  0xef   :  { %v258_v48 = vpop.permute.xlu1 %257  ;;  %v263_v49 = vpop.permute.xlu0 %262  ;;  %s641_s22 = scalar_lea.vmem %s475_s21, 2048  ;;  %p646_p6 = scmp.lt.s32.totalorder %s475_s21, %s475_s21 }
  0xf0   :  { %p642_p5 = scmp.ne.s32.totalorder %s475_s21, %s641_s22  ;;  %p647_p7 = scmp.lt.s32.totalorder %s641_s22, %s641_s22 }
  0xf2   :  { %p648_p8 = por %p647_p7, %p646_p6 }
  0xf3   :  { %v268_v50 = vpop.permute.xlu1 %267  ;;  %v273_v51 = vpop.permute.xlu0 %272 }
  0xf4   :  { %p649_p9 = pnand %p648_p8, %p642_p5 }
  0xf7   :  { %v278_v52 = vpop.permute.xlu1 %277  ;;  %v283_v53 = vpop.permute.xlu0 %282 }
  0xfb   :  { %v288_v55 = vpop.permute.xlu1 %287  ;;  %v293_v58 = vpop.permute.xlu0 %292 }
  0xff   :  { %v298_v2 = vpop.permute.xlu1 %297  ;;  %v303_v7 = vpop.permute.xlu0 %302 }
 0x103   :  { %v308_v16 = vpop.permute.xlu1 %307  ;;  %v313_v19 = vpop.permute.xlu0 %312 }
 0x104   :  { %v571_v54 = vpop.f32.mrf.mxu1 }
 0x105   :  { %v403_v56 = vadd.f32 %v571_v54, %v273_v51 }
 0x106   :  { %v394_v57 = vpop.f32.mrf.mxu1 }
 0x107   :  { %447 = vst [vmem:[#allocation4 + $0x30] sm:$0xff] %v403_v56  ;;  %v395_v59 = vadd.f32 %v394_v57, %v263_v49  ;;  %v318_v24 = vpop.permute.xlu1 %317 }
 0x108   :  { %v567_v60 = vpop.f32.mrf.mxu0  ;;  %v572_v61 = vpop.f32.mrf.mxu1 }
 0x109   :  { %445 = vst [vmem:[#allocation4 + $0x20] sm:$0xff] %v395_v59  ;;  %v387_v62 = vadd.f32 %v567_v60, %v253_v46  ;;  %v406_v63 = vadd.f32 %v572_v61, %v278_v52 }
 0x10a   :  { %v378_v0 = vpop.f32.mrf.mxu0  ;;  %v397_v1 = vpop.f32.mrf.mxu1 }
 0x10b   :  { %443 = vst [vmem:[#allocation4 + $0x10] sm:$0xff] %v387_v62  ;;  %448 = vst [vmem:[#allocation4 + $0x38] sm:$0xff] %v406_v63  ;;  %v379_v3 = vadd.f32 %v378_v0, %v243_v45  ;;  %v398_v4 = vadd.f32 %v397_v1, %v268_v50 }
 0x10c   :  { %v568_v5 = vpop.f32.mrf.mxu0  ;;  %v575_v6 = vpop.f32.mrf.mxu1 }
 0x10d   :  { %441 = vst [vmem:[#allocation4] sm:$0xff] %v379_v3  ;;  %446 = vst [vmem:[#allocation4 + $0x28] sm:$0xff] %v398_v4  ;;  %v390_v8 = vadd.f32 %v568_v5, %v258_v48  ;;  %v419_v9 = vadd.f32 %v575_v6, %v293_v58 }
 0x10e   :  { %v381_v10 = vpop.f32.mrf.mxu0  ;;  %v410_v11 = vpop.f32.mrf.mxu1 }
 0x10f   :  { %444 = vst [vmem:[#allocation4 + $0x18] sm:$0xff] %v390_v8  ;;  %451 = vst [vmem:[#allocation4 + $0x50] sm:$0xff] %v419_v9  ;;  %v382_v12 = vadd.f32 %v381_v10, %v248_v47  ;;  %v411_v13 = vadd.f32 %v410_v11, %v283_v53 }
 0x110   :  { %v576_v14 = vpop.f32.mrf.mxu1 }
 0x111   :  { %442 = vst [vmem:[#allocation4 + $0x8] sm:$0xff] %v382_v12  ;;  %449 = vst [vmem:[#allocation4 + $0x40] sm:$0xff] %v411_v13  ;;  %v422_v15 = vadd.f32 %v576_v14, %v298_v2 }
 0x112   :  { %v413_v17 = vpop.f32.mrf.mxu1 }
 0x113   :  { %452 = vst [vmem:[#allocation4 + $0x58] sm:$0xff] %v422_v15  ;;  %v414_v18 = vadd.f32 %v413_v17, %v288_v55 }
 0x114   :  { %v579_v20 = vpop.f32.mrf.mxu1 }
 0x115   :  { %450 = vst [vmem:[#allocation4 + $0x48] sm:$0xff] %v414_v18  ;;  %v435_v21 = vadd.f32 %v579_v20, %v313_v19 }
 0x116   :  { %v426_v22 = vpop.f32.mrf.mxu1 }
 0x117   :  { %455 = vst [vmem:[#allocation4 + $0x70] sm:$0xff] %v435_v21  ;;  %v427_v23 = vadd.f32 %v426_v22, %v303_v7 }
 0x118   :  { %v580_v25 = vpop.f32.mrf.mxu1 }
 0x119   :  { %453 = vst [vmem:[#allocation4 + $0x60] sm:$0xff] %v427_v23  ;;  %v438_v26 = vadd.f32 %v580_v25, %v318_v24 }
 0x11a   :  { %v429_v27 = vpop.f32.mrf.mxu1 }
 0x11b   :  { %456 = vst [vmem:[#allocation4 + $0x78] sm:$0xff] %v438_v26  ;;  %v430_v28 = vadd.f32 %v429_v27, %v308_v16 }
 0x11d   :  { %454 = vst [vmem:[#allocation4 + $0x68] sm:$0xff] %v430_v28 }
 0x11e   :  { %652 = shalt.err (!%p649_p9)
}
 0x11f   :  { %480 = dma.vmem_to_hbm [thread:$0]  %s475_s21, 2048, %s939_s6, [#allocation5], %s667_s4, %s667_s4, %s668_s18  }
 0x120   :  { %661 = dma.done.wait [#allocation3], 2048  }
 0x121   :  { %662 = vsyncadd [#allocation3], 4294965248 }
 0x122   :  { %663 = dma.done.wait [#allocation5], 2048  }
 0x123   :  { %664 = vsyncadd [#allocation5], 4294965248 }
 0x124   :  { %487 = vsyncpa [#allocation3], 1 }
 0x125   :  { %488 = vsyncpa [#allocation5], 1 }

</bundles_post_ra>
